<compile_context>
chip_gen: v7x
topology: tpu7x:2x2x1
jax: 0.10.0
libtpu: 0.0.40
codegen_flags: <defaults>
</compile_context>

<pallas_src>
import jax
import jax.numpy as jnp
from jax.experimental import pallas as pl
from jax.experimental.pallas import tpu as pltpu
import numpy as np


def seq2seq_kernel(
    enc_x_ref,    # (T_enc*Bp, n_class)   time-major flattened, Bp = padded batch
    dec_x_ref,    # (T_dec*Bp, n_class)   time-major flattened
    h0_ref,       # (Bp, n_hidden)
    w_ih_e_ref,   # (n_class, n_hidden)   == W_ih_enc^T
    w_hh_e_ref,   # (n_hidden, n_hidden)  == W_hh_enc^T
    b_e_ref,      # (1, n_hidden)         == b_ih_enc + b_hh_enc
    w_ih_d_ref,   # (n_class, n_hidden)   == W_ih_dec^T
    w_hh_d_ref,   # (n_hidden, n_hidden)  == W_hh_dec^T
    b_d_ref,      # (1, n_hidden)         == b_ih_dec + b_hh_dec
    w_fc_ref,     # (n_hidden, Cp)        == W_fc^T, lane-padded to Cp
    b_fc_ref,     # (1, Cp)
    out_ref,      # (T_dec*Bp, Cp)        time-major flattened, lane-dense
):
    batch = h0_ref.shape[0]                      # padded batch (multiple of 8)
    t_enc = enc_x_ref.shape[0] // batch
    t_dec = dec_x_ref.shape[0] // batch

    # ---- hoisted weight/bias reads (kept in vregs across the unrolled loops)
    w_hh_e = w_hh_e_ref[...]
    w_hh_d = w_hh_d_ref[...]

    # ---- batched input projections: one MXU call per RNN, off the serial chain
    enc_proj = (
        jnp.dot(enc_x_ref[...], w_ih_e_ref[...],
                preferred_element_type=jnp.float32)
        + b_e_ref[...]
    )                                                   # (T_enc*Bp, H)
    dec_proj = (
        jnp.dot(dec_x_ref[...], w_ih_d_ref[...],
                preferred_element_type=jnp.float32)
        + b_d_ref[...]
    )                                                   # (T_dec*Bp, H)

    # ---- encoder recurrence: h carried in registers, fully unrolled ----
    # Every slice starts on a multiple of 8 rows (sublane-aligned).
    h = h0_ref[...]                                     # (Bp, H)
    for t in range(t_enc):
        h = jnp.tanh(
            enc_proj[t * batch:(t + 1) * batch, :]
            + jnp.dot(h, w_hh_e, preferred_element_type=jnp.float32)
        )

    # ---- decoder recurrence: hidden states kept in vregs, FC deferred ----
    hs = []
    for t in range(t_dec):
        h = jnp.tanh(
            dec_proj[t * batch:(t + 1) * batch, :]
            + jnp.dot(h, w_hh_d, preferred_element_type=jnp.float32)
        )
        hs.append(h)                                    # time order preserved
    hs_all = jnp.concatenate(hs, axis=0)                # (T_dec*Bp, H) in vregs

    # ---- single FC matmul over all decoder steps + one unmasked bulk store ----
    out_ref[...] = (
        jnp.dot(hs_all, w_fc_ref[...], preferred_element_type=jnp.float32)
        + b_fc_ref[...]
    ).astype(out_ref.dtype)


def seq2seq_forward(enc_input, enc_hidden, dec_input, params):
    """enc_input: (B, T_enc, C), enc_hidden: (1, B, H), dec_input: (B, T_dec, C).
    Returns (T_dec, B, C), matching the PyTorch module's output."""
    batch, t_enc, n_class = enc_input.shape
    t_dec = dec_input.shape[1]
    n_hidden = enc_hidden.shape[-1]

    # Sublane-align the batch and lane-densify the output width.
    b_pad = ((batch + 7) // 8) * 8
    c_pad = ((n_class + 127) // 128) * 128
    pad_b = b_pad - batch
    pad_c = c_pad - n_class

    # The module's explicit .transpose(0, 1), fused with a zero-pad of the
    # batch rows and a flatten, so the kernel only sees 2-D time-major slabs
    # whose per-step row blocks are 8-sublane aligned.  Padded batch rows are
    # independent through the RNN recurrence and are sliced off afterwards.
    enc_tm = jnp.pad(jnp.transpose(enc_input, (1, 0, 2)),
                     ((0, 0), (0, pad_b), (0, 0))).reshape(t_enc * b_pad, n_class)
    dec_tm = jnp.pad(jnp.transpose(dec_input, (1, 0, 2)),
                     ((0, 0), (0, pad_b), (0, 0))).reshape(t_dec * b_pad, n_class)
    h0 = jnp.pad(enc_hidden.reshape(batch, n_hidden), ((0, pad_b), (0, 0)))

    # Zero-pad the FC output width to a full 128-lane tile so the bulk output
    # store is unmasked; padded columns are exactly zero and sliced off below.
    w_fc_T = jnp.pad(params["w_fc_T"], ((0, 0), (0, pad_c)))
    b_fc = jnp.pad(params["b_fc"], ((0, 0), (0, pad_c)))

    vmem = pl.BlockSpec(memory_space=pltpu.MemorySpace.VMEM)
    n_inputs = 11

    out_flat = pl.pallas_call(
        seq2seq_kernel,
        out_shape=jax.ShapeDtypeStruct((t_dec * b_pad, c_pad), jnp.float32),
        in_specs=[vmem] * n_inputs,
        out_specs=vmem,
    )(
        enc_tm,
        dec_tm,
        h0,
        params["w_ih_e_T"],
        params["w_hh_e_T"],
        params["b_e"],
        params["w_ih_d_T"],
        params["w_hh_d_T"],
        params["b_d"],
        w_fc_T,
        b_fc,
    )
    # Reshape back to time-major 3-D and strip batch/class padding.
    out = out_flat.reshape(t_dec, b_pad, c_pad)[:, :batch, :n_class]
    return out


def seq2seq_reference(enc_input, enc_hidden, dec_input, params):
    """Pure-JAX reference implementing the same PyTorch semantics."""
    enc_tm = jnp.transpose(enc_input, (1, 0, 2))
    dec_tm = jnp.transpose(dec_input, (1, 0, 2))
    h = enc_hidden[0]
    for t in range(enc_tm.shape[0]):
        h = jnp.tanh(enc_tm[t] @ params["w_ih_e_T"]
                     + h @ params["w_hh_e_T"] + params["b_e"])
    outs = []
    for t in range(dec_tm.shape[0]):
        h = jnp.tanh(dec_tm[t] @ params["w_ih_d_T"]
                     + h @ params["w_hh_d_T"] + params["b_d"])
        outs.append(h @ params["w_fc_T"] + params["b_fc"])
    return jnp.stack(outs, axis=0)


def init_params(key, n_class, n_hidden):
    """Deterministic synthetic parameters with PyTorch-shaped weights,
    pre-transposed for the kernel."""
    ks = jax.random.split(key, 10)
    k = 1.0 / np.sqrt(n_hidden)

    def u(kk, shape):
        return jax.random.uniform(kk, shape, jnp.float32, -k, k)

    w_ih_e = u(ks[0], (n_hidden, n_class))   # nn.RNN weight_ih_l0
    w_hh_e = u(ks[1], (n_hidden, n_hidden))  # nn.RNN weight_hh_l0
    b_ih_e = u(ks[2], (n_hidden,))
    b_hh_e = u(ks[3], (n_hidden,))
    w_ih_d = u(ks[4], (n_hidden, n_class))
    w_hh_d = u(ks[5], (n_hidden, n_hidden))
    b_ih_d = u(ks[6], (n_hidden,))
    b_hh_d = u(ks[7], (n_hidden,))
    w_fc = u(ks[8], (n_class, n_hidden))     # nn.Linear weight
    b_fc = u(ks[9], (n_class,))

    return {
        "w_ih_e_T": w_ih_e.T,
        "w_hh_e_T": w_hh_e.T,
        "b_e": (b_ih_e + b_hh_e)[None, :],
        "w_ih_d_T": w_ih_d.T,
        "w_hh_d_T": w_hh_d.T,
        "b_d": (b_ih_d + b_hh_d)[None, :],
        "w_fc_T": w_fc.T,
        "b_fc": b_fc[None, :],
    }


if __name__ == "__main__":
    n_class = 16
    n_hidden = 32
    batch = 2
    t_enc = 6
    t_dec = 8

    key = jax.random.PRNGKey(0)
    k_enc, k_dec, k_h, k_par = jax.random.split(key, 4)

    enc_input = jax.random.normal(k_enc, (batch, t_enc, n_class), jnp.float32)
    dec_input = jax.random.normal(k_dec, (batch, t_dec, n_class), jnp.float32)
    enc_hidden = jax.random.normal(k_h, (1, batch, n_hidden), jnp.float32)

    params = init_params(k_par, n_class, n_hidden)

    out = seq2seq_forward(enc_input, enc_hidden, dec_input, params)
    out = jax.block_until_ready(out)

    ref = seq2seq_reference(enc_input, enc_hidden, dec_input, params)
    np.testing.assert_allclose(np.asarray(out), np.asarray(ref),
                               rtol=1e-5, atol=1e-5)

    assert out.shape == (t_dec, batch, n_class)
    print("KERNEL_OK")
</pallas_src>

<mosaic_0001>
module attributes {stable_mosaic.version = 11 : i64} {
  func.func @seq2seq_kernel(%arg0: memref<48x16xf32, #tpu.memory_space<vmem>>, %arg1: memref<64x16xf32, #tpu.memory_space<vmem>>, %arg2: memref<8x32xf32, #tpu.memory_space<vmem>>, %arg3: memref<16x32xf32, #tpu.memory_space<vmem>>, %arg4: memref<32x32xf32, #tpu.memory_space<vmem>>, %arg5: memref<1x32xf32, #tpu.memory_space<vmem>>, %arg6: memref<16x32xf32, #tpu.memory_space<vmem>>, %arg7: memref<32x32xf32, #tpu.memory_space<vmem>>, %arg8: memref<1x32xf32, #tpu.memory_space<vmem>>, %arg9: memref<32x128xf32, #tpu.memory_space<vmem>>, %arg10: memref<1x128xf32, #tpu.memory_space<vmem>>, %arg11: memref<64x128xf32, #tpu.memory_space<vmem>>) attributes {dimension_semantics = [], scalar_prefetch = 0 : i64, scratch_operands = 0 : i64, tpu.core_type = #tpu.core_type<tc>} {
    %c0 = arith.constant 0 : index
    %c0_0 = arith.constant 0 : index
    %0 = vector.load %arg4[%c0, %c0_0] : memref<32x32xf32, #tpu.memory_space<vmem>>, vector<32x32xf32>
    %c0_1 = arith.constant 0 : index
    %c0_2 = arith.constant 0 : index
    %1 = vector.load %arg7[%c0_1, %c0_2] : memref<32x32xf32, #tpu.memory_space<vmem>>, vector<32x32xf32>
    %c0_3 = arith.constant 0 : index
    %c0_4 = arith.constant 0 : index
    %2 = vector.load %arg0[%c0_3, %c0_4] : memref<48x16xf32, #tpu.memory_space<vmem>>, vector<48x16xf32>
    %c0_5 = arith.constant 0 : index
    %c0_6 = arith.constant 0 : index
    %3 = vector.load %arg3[%c0_5, %c0_6] : memref<16x32xf32, #tpu.memory_space<vmem>>, vector<16x32xf32>
    %cst = arith.constant dense<0.000000e+00> : vector<48x32xf32>
    %4 = tpu.matmul %2, %3, %cst {dimension_numbers = #tpu.dot_dimension_numbers<[1], [0], [0], [1], [0, 0, 1, 1], [], []>} : vector<48x16xf32>, vector<16x32xf32>, vector<48x32xf32> -> vector<48x32xf32>
    %c0_7 = arith.constant 0 : index
    %c0_8 = arith.constant 0 : index
    %5 = vector.load %arg5[%c0_7, %c0_8] : memref<1x32xf32, #tpu.memory_space<vmem>>, vector<1x32xf32>
    %6 = vector.broadcast %5 : vector<1x32xf32> to vector<48x32xf32>
    %7 = arith.addf %4, %6 : vector<48x32xf32>
    %c0_9 = arith.constant 0 : index
    %c0_10 = arith.constant 0 : index
    %8 = vector.load %arg1[%c0_9, %c0_10] : memref<64x16xf32, #tpu.memory_space<vmem>>, vector<64x16xf32>
    %c0_11 = arith.constant 0 : index
    %c0_12 = arith.constant 0 : index
    %9 = vector.load %arg6[%c0_11, %c0_12] : memref<16x32xf32, #tpu.memory_space<vmem>>, vector<16x32xf32>
    %cst_13 = arith.constant dense<0.000000e+00> : vector<64x32xf32>
    %10 = tpu.matmul %8, %9, %cst_13 {dimension_numbers = #tpu.dot_dimension_numbers<[1], [0], [0], [1], [0, 0, 1, 1], [], []>} : vector<64x16xf32>, vector<16x32xf32>, vector<64x32xf32> -> vector<64x32xf32>
    %c0_14 = arith.constant 0 : index
    %c0_15 = arith.constant 0 : index
    %11 = vector.load %arg8[%c0_14, %c0_15] : memref<1x32xf32, #tpu.memory_space<vmem>>, vector<1x32xf32>
    %12 = vector.broadcast %11 : vector<1x32xf32> to vector<64x32xf32>
    %13 = arith.addf %10, %12 : vector<64x32xf32>
    %c0_16 = arith.constant 0 : index
    %c0_17 = arith.constant 0 : index
    %14 = vector.load %arg2[%c0_16, %c0_17] : memref<8x32xf32, #tpu.memory_space<vmem>>, vector<8x32xf32>
    %15 = vector.extract_strided_slice %7 {offsets = [0, 0], sizes = [8, 32], strides = [1, 1]} : vector<48x32xf32> to vector<8x32xf32>
    %cst_18 = arith.constant dense<0.000000e+00> : vector<8x32xf32>
    %16 = tpu.matmul %14, %0, %cst_18 {dimension_numbers = #tpu.dot_dimension_numbers<[1], [0], [0], [1], [0, 0, 1, 1], [], []>} : vector<8x32xf32>, vector<32x32xf32>, vector<8x32xf32> -> vector<8x32xf32>
    %17 = arith.addf %15, %16 : vector<8x32xf32>
    %18 = math.tanh %17 : vector<8x32xf32>
    %19 = vector.extract_strided_slice %7 {offsets = [8, 0], sizes = [8, 32], strides = [1, 1]} : vector<48x32xf32> to vector<8x32xf32>
    %cst_19 = arith.constant dense<0.000000e+00> : vector<8x32xf32>
    %20 = tpu.matmul %18, %0, %cst_19 {dimension_numbers = #tpu.dot_dimension_numbers<[1], [0], [0], [1], [0, 0, 1, 1], [], []>} : vector<8x32xf32>, vector<32x32xf32>, vector<8x32xf32> -> vector<8x32xf32>
    %21 = arith.addf %19, %20 : vector<8x32xf32>
    %22 = math.tanh %21 : vector<8x32xf32>
    %23 = vector.extract_strided_slice %7 {offsets = [16, 0], sizes = [8, 32], strides = [1, 1]} : vector<48x32xf32> to vector<8x32xf32>
    %cst_20 = arith.constant dense<0.000000e+00> : vector<8x32xf32>
    %24 = tpu.matmul %22, %0, %cst_20 {dimension_numbers = #tpu.dot_dimension_numbers<[1], [0], [0], [1], [0, 0, 1, 1], [], []>} : vector<8x32xf32>, vector<32x32xf32>, vector<8x32xf32> -> vector<8x32xf32>
    %25 = arith.addf %23, %24 : vector<8x32xf32>
    %26 = math.tanh %25 : vector<8x32xf32>
    %27 = vector.extract_strided_slice %7 {offsets = [24, 0], sizes = [8, 32], strides = [1, 1]} : vector<48x32xf32> to vector<8x32xf32>
    %cst_21 = arith.constant dense<0.000000e+00> : vector<8x32xf32>
    %28 = tpu.matmul %26, %0, %cst_21 {dimension_numbers = #tpu.dot_dimension_numbers<[1], [0], [0], [1], [0, 0, 1, 1], [], []>} : vector<8x32xf32>, vector<32x32xf32>, vector<8x32xf32> -> vector<8x32xf32>
    %29 = arith.addf %27, %28 : vector<8x32xf32>
    %30 = math.tanh %29 : vector<8x32xf32>
    %31 = vector.extract_strided_slice %7 {offsets = [32, 0], sizes = [8, 32], strides = [1, 1]} : vector<48x32xf32> to vector<8x32xf32>
    %cst_22 = arith.constant dense<0.000000e+00> : vector<8x32xf32>
    %32 = tpu.matmul %30, %0, %cst_22 {dimension_numbers = #tpu.dot_dimension_numbers<[1], [0], [0], [1], [0, 0, 1, 1], [], []>} : vector<8x32xf32>, vector<32x32xf32>, vector<8x32xf32> -> vector<8x32xf32>
    %33 = arith.addf %31, %32 : vector<8x32xf32>
    %34 = math.tanh %33 : vector<8x32xf32>
    %35 = vector.extract_strided_slice %7 {offsets = [40, 0], sizes = [8, 32], strides = [1, 1]} : vector<48x32xf32> to vector<8x32xf32>
    %cst_23 = arith.constant dense<0.000000e+00> : vector<8x32xf32>
    %36 = tpu.matmul %34, %0, %cst_23 {dimension_numbers = #tpu.dot_dimension_numbers<[1], [0], [0], [1], [0, 0, 1, 1], [], []>} : vector<8x32xf32>, vector<32x32xf32>, vector<8x32xf32> -> vector<8x32xf32>
    %37 = arith.addf %35, %36 : vector<8x32xf32>
    %38 = math.tanh %37 : vector<8x32xf32>
    %39 = vector.extract_strided_slice %13 {offsets = [0, 0], sizes = [8, 32], strides = [1, 1]} : vector<64x32xf32> to vector<8x32xf32>
    %cst_24 = arith.constant dense<0.000000e+00> : vector<8x32xf32>
    %40 = tpu.matmul %38, %1, %cst_24 {dimension_numbers = #tpu.dot_dimension_numbers<[1], [0], [0], [1], [0, 0, 1, 1], [], []>} : vector<8x32xf32>, vector<32x32xf32>, vector<8x32xf32> -> vector<8x32xf32>
    %41 = arith.addf %39, %40 : vector<8x32xf32>
    %42 = math.tanh %41 : vector<8x32xf32>
    %43 = vector.extract_strided_slice %13 {offsets = [8, 0], sizes = [8, 32], strides = [1, 1]} : vector<64x32xf32> to vector<8x32xf32>
    %cst_25 = arith.constant dense<0.000000e+00> : vector<8x32xf32>
    %44 = tpu.matmul %42, %1, %cst_25 {dimension_numbers = #tpu.dot_dimension_numbers<[1], [0], [0], [1], [0, 0, 1, 1], [], []>} : vector<8x32xf32>, vector<32x32xf32>, vector<8x32xf32> -> vector<8x32xf32>
    %45 = arith.addf %43, %44 : vector<8x32xf32>
    %46 = math.tanh %45 : vector<8x32xf32>
    %47 = vector.extract_strided_slice %13 {offsets = [16, 0], sizes = [8, 32], strides = [1, 1]} : vector<64x32xf32> to vector<8x32xf32>
    %cst_26 = arith.constant dense<0.000000e+00> : vector<8x32xf32>
    %48 = tpu.matmul %46, %1, %cst_26 {dimension_numbers = #tpu.dot_dimension_numbers<[1], [0], [0], [1], [0, 0, 1, 1], [], []>} : vector<8x32xf32>, vector<32x32xf32>, vector<8x32xf32> -> vector<8x32xf32>
    %49 = arith.addf %47, %48 : vector<8x32xf32>
    %50 = math.tanh %49 : vector<8x32xf32>
    %51 = vector.extract_strided_slice %13 {offsets = [24, 0], sizes = [8, 32], strides = [1, 1]} : vector<64x32xf32> to vector<8x32xf32>
    %cst_27 = arith.constant dense<0.000000e+00> : vector<8x32xf32>
    %52 = tpu.matmul %50, %1, %cst_27 {dimension_numbers = #tpu.dot_dimension_numbers<[1], [0], [0], [1], [0, 0, 1, 1], [], []>} : vector<8x32xf32>, vector<32x32xf32>, vector<8x32xf32> -> vector<8x32xf32>
    %53 = arith.addf %51, %52 : vector<8x32xf32>
    %54 = math.tanh %53 : vector<8x32xf32>
    %55 = vector.extract_strided_slice %13 {offsets = [32, 0], sizes = [8, 32], strides = [1, 1]} : vector<64x32xf32> to vector<8x32xf32>
    %cst_28 = arith.constant dense<0.000000e+00> : vector<8x32xf32>
    %56 = tpu.matmul %54, %1, %cst_28 {dimension_numbers = #tpu.dot_dimension_numbers<[1], [0], [0], [1], [0, 0, 1, 1], [], []>} : vector<8x32xf32>, vector<32x32xf32>, vector<8x32xf32> -> vector<8x32xf32>
    %57 = arith.addf %55, %56 : vector<8x32xf32>
    %58 = math.tanh %57 : vector<8x32xf32>
    %59 = vector.extract_strided_slice %13 {offsets = [40, 0], sizes = [8, 32], strides = [1, 1]} : vector<64x32xf32> to vector<8x32xf32>
    %cst_29 = arith.constant dense<0.000000e+00> : vector<8x32xf32>
    %60 = tpu.matmul %58, %1, %cst_29 {dimension_numbers = #tpu.dot_dimension_numbers<[1], [0], [0], [1], [0, 0, 1, 1], [], []>} : vector<8x32xf32>, vector<32x32xf32>, vector<8x32xf32> -> vector<8x32xf32>
    %61 = arith.addf %59, %60 : vector<8x32xf32>
    %62 = math.tanh %61 : vector<8x32xf32>
    %63 = vector.extract_strided_slice %13 {offsets = [48, 0], sizes = [8, 32], strides = [1, 1]} : vector<64x32xf32> to vector<8x32xf32>
    %cst_30 = arith.constant dense<0.000000e+00> : vector<8x32xf32>
    %64 = tpu.matmul %62, %1, %cst_30 {dimension_numbers = #tpu.dot_dimension_numbers<[1], [0], [0], [1], [0, 0, 1, 1], [], []>} : vector<8x32xf32>, vector<32x32xf32>, vector<8x32xf32> -> vector<8x32xf32>
    %65 = arith.addf %63, %64 : vector<8x32xf32>
    %66 = math.tanh %65 : vector<8x32xf32>
    %67 = vector.extract_strided_slice %13 {offsets = [56, 0], sizes = [8, 32], strides = [1, 1]} : vector<64x32xf32> to vector<8x32xf32>
    %cst_31 = arith.constant dense<0.000000e+00> : vector<8x32xf32>
    %68 = tpu.matmul %66, %1, %cst_31 {dimension_numbers = #tpu.dot_dimension_numbers<[1], [0], [0], [1], [0, 0, 1, 1], [], []>} : vector<8x32xf32>, vector<32x32xf32>, vector<8x32xf32> -> vector<8x32xf32>
    %69 = arith.addf %67, %68 : vector<8x32xf32>
    %70 = math.tanh %69 : vector<8x32xf32>
    %71 = tpu.concatenate %42, %46, %50, %54, %58, %62, %66, %70 in 0 : vector<8x32xf32>, vector<8x32xf32>, vector<8x32xf32>, vector<8x32xf32>, vector<8x32xf32>, vector<8x32xf32>, vector<8x32xf32>, vector<8x32xf32> -> vector<64x32xf32>
    %c0_32 = arith.constant 0 : index
    %c0_33 = arith.constant 0 : index
    %72 = vector.load %arg9[%c0_32, %c0_33] : memref<32x128xf32, #tpu.memory_space<vmem>>, vector<32x128xf32>
    %cst_34 = arith.constant dense<0.000000e+00> : vector<64x128xf32>
    %73 = tpu.matmul %71, %72, %cst_34 {dimension_numbers = #tpu.dot_dimension_numbers<[1], [0], [0], [1], [0, 0, 1, 1], [], []>} : vector<64x32xf32>, vector<32x128xf32>, vector<64x128xf32> -> vector<64x128xf32>
    %c0_35 = arith.constant 0 : index
    %c0_36 = arith.constant 0 : index
    %74 = vector.load %arg10[%c0_35, %c0_36] : memref<1x128xf32, #tpu.memory_space<vmem>>, vector<1x128xf32>
    %75 = vector.broadcast %74 : vector<1x128xf32> to vector<64x128xf32>
    %76 = arith.addf %73, %75 : vector<64x128xf32>
    %c0_37 = arith.constant 0 : index
    %c0_38 = arith.constant 0 : index
    %77 = vector.load %arg11[%c0_37, %c0_38] : memref<64x128xf32, #tpu.memory_space<vmem>>, vector<64x128xf32>
    tpu.vector_store %arg11[%c0_37, %c0_38], %76 {strides = array<i32>} : memref<64x128xf32, #tpu.memory_space<vmem>>, vector<64x128xf32>,
    return
  }
}

</mosaic_0001>

<bundles_post_ra>
// kernel: tpu_custom_call.1
= control target key start
LH: loop header
LB: loop body
LE: loop exit
PB: predicated region body
PF: predicated region fallthrough
CT: control target
= control target key end

     0   :  { %16 = vsyncpa [#allocation3], 0  ;;  %s2419_s0 = inlined_call_operand.vmem [shape: f32[48,16], index: 0, kind: input, shape index: {}]   ;;  %s2420_s1 = inlined_call_operand.vmem [shape: f32[64,16], index: 1, kind: input, shape index: {}]   ;;  %s2421_s2 = inlined_call_operand.hbm [shape: f32[8,32], index: 2, kind: input, shape index: {}]   ;;  %s2422_s3 = inlined_call_operand.vmem [shape: f32[16,32], index: 3, kind: input, shape index: {}]   ;;  %s2423_s4 = inlined_call_operand.vmem [shape: f32[32,32], index: 4, kind: input, shape index: {}]   ;;  %s2424_s5 = inlined_call_operand.vmem [shape: f32[1,32], index: 5, kind: input, shape index: {}]   ;;  %s2425_s6 = inlined_call_operand.vmem [shape: f32[16,32], index: 6, kind: input, shape index: {}]   ;;  %s2426_s7 = inlined_call_operand.vmem [shape: f32[32,32], index: 7, kind: input, shape index: {}]   ;;  %s2427_s8 = inlined_call_operand.vmem [shape: f32[1,32], index: 8, kind: input, shape index: {}]   ;;  %s2428_s9 = inlined_call_operand.vmem [shape: f32[32,128], index: 9, kind: input, shape index: {}]   ;;  %s2429_s10 = inlined_call_operand.vmem [shape: f32[1,128], index: 10, kind: input, shape index: {}]   ;;  %s2430_s11 = inlined_call_operand.hbm [shape: f32[64,128], index: 11, kind: output, shape index: {}]  }
   0x1   :  { %17 = vsyncpa [#allocation4], 0  ;;  %s2055_s17 = smov [#allocation2]   ;;  %s2007_s21 = scalar_lea.hbm %s2421_s2, 128 }
   0x2   :  { %s28_s18 = sshll.u32 %s2055_s17, 4  ;;  %p2008_p0 = scmp.ne.s32.totalorder %s2421_s2, %s2007_s21  ;;  %s29_s18 = int_to_ptr.vmem [resolvable:$true] %s28_s18 }
   0x3   :  { %p2011_p1 = scmp.lt.u32.totalorder %s2007_s21, %s2421_s2 }
   0x5   :  { %p2013_p2 = pnand %p2011_p1, %p2008_p0 }
   0x7   :  { %2016 = shalt.err (!%p2013_p2)
}
   0x8   :  { %s2017_s26 = scalar_lea.vmem %s29_s18, 128  ;;  %p2022_p4 = scmp.lt.s32.totalorder %s29_s18, %s29_s18 }
   0x9   :  { %p2018_p3 = scmp.ne.s32.totalorder %s29_s18, %s2017_s26  ;;  %p2023_p5 = scmp.lt.s32.totalorder %s2017_s26, %s2017_s26 }
   0xb   :  { %p2024_p6 = por %p2023_p5, %p2022_p4 }
   0xd   :  { %p2025_p7 = pnand %p2024_p6, %p2018_p3 }
   0xf   :  { %2028 = shalt.err (!%p2025_p7)
}
  0x10   :  { %31 = dma.hbm_to_vmem [thread:$0]  %s2421_s2, 128, %s29_s18, [#allocation3]  }
  0x11   :  { %2051 = dma.done.wait [#allocation3], 128  }
  0x12   :  { %2052 = vsyncadd [#allocation3], 4294967168  ;;  %vm74_vm0 = vcmask 130048   ;;  %v196_v0 = vld [vmem:[%s2425_s6] sm:$0xff]  ;;  %v197_v1 = vld [vmem:[%s2425_s6 + $0x8] sm:$0xff]  ;;  %v2056_v12 = vmov 0.0|0.0  }
  0x13   :  { %v188_v2 = vld [vmem:[%s2420_s1] sm:$0xff]  ;;  %v1876_v3 = vpack.c.bf16 %v197_v1, %v196_v0  ;;  %v52_v5 = vld [vmem:[%s2423_s4 + $0x8] sm:$0xff]  ;;  %v190_v10 = vld [vmem:[%s2420_s1 + $0x10] sm:$0xff]  ;;  %vm2057_vm1 = vmmov 0   ;;  %v2058_v23 = vmov 0.0   ;;  %vm335_vm2 = vcmask 261120  }
  0x14   :  { %1686 = vmatprep.mubr.msk.f32.mxu1 %vm74_vm0, %v188_v2  ;;  %v51_v4 = vld [vmem:[%s2423_s4] sm:$0xff]  ;;  %v66_v7 = vld [vmem:[%s2422_s3 + $0x8] sm:$0xff]  ;;  %v53_v13 = vld [vmem:[%s2423_s4 + $0x10] sm:$0xff] }
  0x15   :  { %1877 = vmatprep.subr.bf16.mxu1 %v1876_v3  ;;  %v65_v6 = vld [vmem:[%s2422_s3] sm:$0xff]  ;;  %v189_v8 = vld [vmem:[%s2420_s1 + $0x8] sm:$0xff]  ;;  %v2159_v9 = vpack.c.bf16 %v52_v5, %v51_v4  ;;  %v54_v14 = vld [vmem:[%s2423_s4 + $0x18] sm:$0xff] }
  0x16   :  { %1879 = vmatpush3.bf16.msra.mxu1 %v1876_v3  ;;  %v1872_v11 = vpack.c.bf16 %v66_v7, %v65_v6  ;;  %v59_v15 = vld [vmem:[%s2419_s0] sm:$0xff]  ;;  %v60_v16 = vld [vmem:[%s2419_s0 + $0x8] sm:$0xff]  ;;  %v191_v17 = vld [vmem:[%s2420_s1 + $0x18] sm:$0xff]  ;;  %v2184_v18 = vpack.c.bf16 %v54_v14, %v53_v13 }
  0x17   :  { %1880 = vmatprep.subr.bf16.mxu1 %v2056_v12  ;;  %1673 = vmatprep.mubr.msk.f32.mxu0 %vm74_vm0, %v59_v15  ;;  %v192_v19 = vld [vmem:[%s2420_s1 + $0x20] sm:$0xff]  ;;  %v193_v20 = vld [vmem:[%s2420_s1 + $0x28] sm:$0xff]  ;;  %v194_v21 = vld [vmem:[%s2420_s1 + $0x30] sm:$0xff] }
  0x18   :  { %1873 = vmatprep.subr.bf16.mxu0 %v1872_v11  ;;  %v195_v22 = vld [vmem:[%s2420_s1 + $0x38] sm:$0xff]  ;;  %v334_v24 = vld [vmem:[#allocation2] sm:$0xff]  ;;  %v61_v49 = vld [vmem:[%s2419_s0 + $0x10] sm:$0xff] }
  0x19   :  { %1687 = vmatmul.mubr.msk.f32.vlgmr.msra.gmra.mrb[0].mxu1 %vm74_vm0, %v189_v8  ;;  %1875 = vmatpush3.bf16.msra.mxu0 %v1872_v11  ;;  %v2224_v25 = vld [vmem:[%s2427_s8] ss:$0 sm:$0xff]  ;;  %v62_v50 = vld [vmem:[%s2419_s0 + $0x18] sm:$0xff]  ;;  %v64_v52 = vld [vmem:[%s2419_s0 + $0x28] sm:$0xff] }
  0x1a   :  { %1882 = vmatpush3.bf16.msra.mxu1 %v2159_v9  ;;  %1689 = vmatprep.mubr.msk.f32.mxu1 %vm74_vm0, %v190_v10  ;;  %v2246_v39 = vld [vmem:[%s2424_s5] ss:$0 sm:$0xff]  ;;  %v56_v15 = vld [vmem:[%s2426_s7 + $0x8] sm:$0xff] }
  0x1b   :  { %1883 = vmatprep.subr.bf16.mxu1 %v2056_v12  ;;  %1892 = vmatprep.subr.bf16.mxu0 %v2056_v12  ;;  %v63_v51 = vld [vmem:[%s2419_s0 + $0x20] sm:$0xff] }
  0x1c   :  { %1674 = vmatmul.mubr.msk.f32.vlgmr.msra.gmra.mrb[0].mxu0 %vm74_vm0, %v60_v16  ;;  %v55_v14 = vld [vmem:[%s2426_s7] sm:$0xff]  ;;  %v57_v16 = vld [vmem:[%s2426_s7 + $0x10] sm:$0xff] }
  0x1d   :  { %1690 = vmatmul.mubr.msk.f32.gmra.mrb[2].mxu1 %vm74_vm0, %v191_v17  ;;  %1894 = vmatpush3.bf16.msra.mxu0 %v2159_v9  ;;  %v2313_v17 = vpack.c.bf16 %v56_v15, %v55_v14 }
  0x1e   :  { %1692 = vmatprep.mubr.msk.f32.mxu1 %vm74_vm0, %v192_v19  ;;  %1885 = vmatpush3.bf16.msra.mxu1 %v2184_v18 }
  0x1f   :  { %1886 = vmatprep.subr.bf16.mxu1 %v2056_v12  ;;  %1895 = vmatprep.subr.bf16.mxu0 %v2056_v12 }
  0x20   :  { %1676 = vmatprep.mubr.msk.f32.mxu0 %vm74_vm0, %v61_v49 }
  0x21   :  { %1693 = vmatmul.mubr.msk.f32.gmra.mrb[4].mxu1 %vm74_vm0, %v193_v20  ;;  %1897 = vmatpush3.bf16.msra.mxu0 %v2184_v18 }
  0x22   :  { %1695 = vmatprep.mubr.msk.f32.mxu1 %vm74_vm0, %v194_v21  ;;  %1904 = vmatprep.subr.bf16.mxu0 %v2056_v12 }
  0x23   :  { %1677 = vmatmul.mubr.msk.f32.gmra.mrb[2].mxu0 %vm74_vm0, %v62_v50 }
  0x24   :  { %1679 = vmatprep.mubr.msk.f32.mxu0 %vm74_vm0, %v63_v51  ;;  %v1386_v51 = vld [vmem:[%s2428_s9] sm:$0xff] }
  0x25   :  { %1696 = vmatmul.mubr.msk.f32.gmra.mrb[6].mxu1 %vm74_vm0, %v195_v22 }
  0x26   :  { %1706 = vmatprep.mubr.msk.f32.mxu1 %vm2057_vm1, %v2058_v23 }
  0x27   :  { %1680 = vmatmul.mubr.msk.f32.gmra.mrb[4].mxu0 %vm74_vm0, %v64_v52 }
  0x28   :  { %1728 = vmatprep.mubr.msk.f32.mxu0 %vm2057_vm1, %v2058_v23 }
  0x29   :  { %1707 = vmatmul.mubr.msk.f32.vlgmr.msra.gmra.mrb[8].mxu1 %vm335_vm2, %v334_v24 }
  0x2a   :  { %1888 = vmatpush3.bf16.msra.mxu1 %v2159_v9  ;;  %1717 = vmatprep.mubr.msk.f32.mxu1 %vm2057_vm1, %v2058_v23 }
  0x2b   :  { %1889 = vmatprep.subr.bf16.mxu1 %v2056_v12 }
  0x2e   :  { %1891 = vmatpush3.bf16.msra.mxu1 %v2184_v18 }
  0x2f   :  { %1898 = vmatprep.subr.bf16.mxu1 %v2056_v12 }
  0xec   :  { %v1688_v26 = vpop.f32.mrb[0].mxu1 }
  0xed   :  { %v2227_v27 = vadd.f32 %v1688_v26, %v2224_v25  ;;  %v2229_v28 = vpop.f32.mrb[1].mxu1 }
  0xef   :  { %v1675_v29 = vpop.f32.mrb[0].mxu0 }
  0xf0   :  { %v1691_v30 = vpop.f32.mrb[2].mxu1  ;;  %v159_v31 = vpop.f32.mrb[1].mxu0  ;;  %v165_v53 = vadd.f32 %v1675_v29, %v2246_v39  ;;  %v296_v29 = vadd.f32 %v2224_v25, %v2229_v28 }
  0xf1   :  { %v2232_v32 = vadd.f32 %v1691_v30, %v2224_v25  ;;  %v305_v33 = vpop.f32.mrb[3].mxu1  ;;  %v160_v43 = vadd.f32 %v2246_v39, %v159_v31 }
  0xf2   :  { %v2235_v34 = vadd.f32 %v2224_v25, %v305_v33 }
  0xf4   :  { %v1694_v35 = vpop.f32.mrb[4].mxu1 }
  0xf5   :  { %v2238_v36 = vadd.f32 %v1694_v35, %v2224_v25  ;;  %v315_v37 = vpop.f32.mrb[5].mxu1 }
  0xf6   :  { %v2241_v38 = vadd.f32 %v2224_v25, %v315_v37  ;;  %v1678_v58 = vpop.f32.mrb[2].mxu0 }
  0xf7   :  { %v169_v59 = vpop.f32.mrb[3].mxu0  ;;  %v175_v3 = vadd.f32 %v1678_v58, %v2246_v39 }
  0xf8   :  { %v1697_v40 = vpop.f32.mrb[6].mxu1  ;;  %v170_v62 = vadd.f32 %v2246_v39, %v169_v59 }
  0xf9   :  { %v2249_v41 = vadd.f32 %v1697_v40, %v2224_v25  ;;  %v325_v42 = vpop.f32.mrb[7].mxu1 }
  0xfa   :  { %v2253_v44 = vadd.f32 %v2224_v25, %v325_v42  ;;  %v1681_v60 = vpop.f32.mrb[4].mxu0 }
  0xfb   :  { %v179_v61 = vpop.f32.mrb[5].mxu0  ;;  %v185_v20 = vadd.f32 %v1681_v60, %v2246_v39  ;;  %v1560_v60 = vld [vmem:[%s2429_s10] ss:$0 sm:$0xff]  ;;  %s2059_s10 = smov [#allocation5]  }
  0xfc   :  { %v405_v45 = vpop.f32.mrb[8].mxu1  ;;  %v180_v8 = vadd.f32 %v2246_v39, %v179_v61  ;;  %s1518_s21 = sshll.u32 %s2059_s10, 4  ;;  %s1519_s21 = int_to_ptr.vmem [resolvable:$true] %s1518_s21 }
  0xfd   :  { %v409_v46 = vadd.f32 %v405_v45, %v160_v43  ;;  %v1708_v47 = vpop.f32.mrb[9].mxu1  ;;  %s2029_s8 = scalar_lea.vmem %s1519_s21, 1024  ;;  %p2034_p9 = scmp.lt.s32.totalorder %s1519_s21, %s1519_s21 }
  0xfe   :  { %p2030_p8 = scmp.ne.s32.totalorder %s1519_s21, %s2029_s8  ;;  %p2035_p10 = scmp.lt.s32.totalorder %s2029_s8, %s2029_s8 }
  0xff   :  { %1979 = vtanh.f32 %v409_v46 }
 0x100   :  { %p2036_p11 = por %p2035_p10, %p2034_p9 }
 0x102   :  { %p2037_p12 = pnand %p2036_p11, %p2030_p8 }
 0x109   :  { %v1980_v48 = vpop.eup %1979 }
 0x10a   :  { %1718 = vmatmul.mubr.msk.f32.vlgmr.msra.gmra.mrb[10].mxu1 %vm335_vm2, %v1980_v48 }
 0x10b   :  { %1900 = vmatpush3.bf16.msra.mxu1 %v2159_v9  ;;  %1739 = vmatprep.mubr.msk.f32.mxu1 %vm2057_vm1, %v2058_v23 }
 0x10c   :  { %1901 = vmatprep.subr.bf16.mxu1 %v2056_v12 }
 0x10f   :  { %1903 = vmatpush3.bf16.msra.mxu1 %v2184_v18 }
 0x110   :  { %1910 = vmatprep.subr.bf16.mxu1 %v2056_v12 }
 0x1dd   :  { %v480_v54 = vpop.f32.mrb[10].mxu1 }
 0x1de   :  { %v484_v55 = vadd.f32 %v480_v54, %v165_v53  ;;  %v1719_v56 = vpop.f32.mrb[11].mxu1 }
 0x1e0   :  { %1981 = vtanh.f32 %v484_v55 }
 0x1ea   :  { %v1982_v57 = vpop.eup %1981 }
 0x1eb   :  { %1729 = vmatmul.mubr.msk.f32.vlgmr.msra.gmra.mrb[6].mxu0 %vm335_vm2, %v1982_v57 }
 0x1ec   :  { %1906 = vmatpush3.bf16.msra.mxu0 %v2159_v9  ;;  %1750 = vmatprep.mubr.msk.f32.mxu0 %vm2057_vm1, %v2058_v23 }
 0x1ed   :  { %1907 = vmatprep.subr.bf16.mxu0 %v2056_v12 }
 0x1f0   :  { %1909 = vmatpush3.bf16.msra.mxu0 %v2184_v18 }
 0x1f1   :  { %1916 = vmatprep.subr.bf16.mxu0 %v2056_v12 }
 0x2be   :  { %v555_v63 = vpop.f32.mrb[6].mxu0 }
 0x2bf   :  { %v559_v0 = vadd.f32 %v555_v63, %v170_v62  ;;  %v1730_v1 = vpop.f32.mrb[7].mxu0 }
 0x2c1   :  { %1983 = vtanh.f32 %v559_v0 }
 0x2cb   :  { %v1984_v2 = vpop.eup %1983 }
 0x2cc   :  { %1740 = vmatmul.mubr.msk.f32.vlgmr.msra.gmra.mrb[12].mxu1 %vm335_vm2, %v1984_v2 }
 0x2cd   :  { %1912 = vmatpush3.bf16.msra.mxu1 %v2159_v9  ;;  %1761 = vmatprep.mubr.msk.f32.mxu1 %vm2057_vm1, %v2058_v23 }
 0x2ce   :  { %1913 = vmatprep.subr.bf16.mxu1 %v2056_v12 }
 0x2d1   :  { %1915 = vmatpush3.bf16.msra.mxu1 %v2184_v18  ;;  %v58_v18 = vld [vmem:[%s2426_s7 + $0x18] sm:$0xff] }
 0x2d2   :  { %1922 = vmatprep.subr.bf16.mxu1 %v2056_v12  ;;  %v2319_v19 = vpack.c.bf16 %v58_v18, %v57_v16 }
 0x39f   :  { %v630_v4 = vpop.f32.mrb[12].mxu1 }
 0x3a0   :  { %v634_v5 = vadd.f32 %v630_v4, %v175_v3  ;;  %v1741_v6 = vpop.f32.mrb[13].mxu1 }
 0x3a2   :  { %1985 = vtanh.f32 %v634_v5 }
 0x3ac   :  { %v1986_v7 = vpop.eup %1985 }
 0x3ad   :  { %1751 = vmatmul.mubr.msk.f32.vlgmr.msra.gmra.mrb[8].mxu0 %vm335_vm2, %v1986_v7 }
 0x3ae   :  { %1772 = vmatprep.mubr.msk.f32.mxu0 %vm2057_vm1, %v2058_v23  ;;  %1918 = vmatpush3.bf16.msra.mxu0 %v2313_v17 }
 0x3af   :  { %1919 = vmatprep.subr.bf16.mxu0 %v2056_v12 }
 0x3b2   :  { %1921 = vmatpush3.bf16.msra.mxu0 %v2319_v19 }
 0x3b3   :  { %1928 = vmatprep.subr.bf16.mxu0 %v2056_v12 }
 0x480   :  { %v705_v9 = vpop.f32.mrb[8].mxu0 }
 0x481   :  { %v709_v10 = vadd.f32 %v705_v9, %v180_v8  ;;  %v1752_v11 = vpop.f32.mrb[9].mxu0 }
 0x483   :  { %1987 = vtanh.f32 %v709_v10 }
 0x48d   :  { %v1988_v13 = vpop.eup %1987 }
 0x48e   :  { %1762 = vmatmul.mubr.msk.f32.vlgmr.msra.gmra.mrb[14].mxu1 %vm335_vm2, %v1988_v13 }
 0x48f   :  { %1783 = vmatprep.mubr.msk.f32.mxu1 %vm2057_vm1, %v2058_v23  ;;  %1924 = vmatpush3.bf16.msra.mxu1 %v2313_v17 }
 0x490   :  { %1925 = vmatprep.subr.bf16.mxu1 %v2056_v12 }
 0x493   :  { %1927 = vmatpush3.bf16.msra.mxu1 %v2319_v19 }
 0x494   :  { %1934 = vmatprep.subr.bf16.mxu1 %v2056_v12 }
 0x561   :  { %v780_v21 = vpop.f32.mrb[14].mxu1 }
 0x562   :  { %v784_v22 = vadd.f32 %v780_v21, %v185_v20  ;;  %v1763_v24 = vpop.f32.mrb[15].mxu1 }
 0x564   :  { %1989 = vtanh.f32 %v784_v22 }
 0x56e   :  { %v1990_v26 = vpop.eup %1989 }
 0x56f   :  { %1773 = vmatmul.mubr.msk.f32.vlgmr.msra.gmra.mrb[10].mxu0 %vm335_vm2, %v1990_v26 }
 0x570   :  { %1930 = vmatpush3.bf16.msra.mxu0 %v2313_v17  ;;  %1794 = vmatprep.mubr.msk.f32.mxu0 %vm2057_vm1, %v2058_v23 }
 0x571   :  { %1931 = vmatprep.subr.bf16.mxu0 %v2056_v12 }
 0x574   :  { %1933 = vmatpush3.bf16.msra.mxu0 %v2319_v19 }
 0x575   :  { %1940 = vmatprep.subr.bf16.mxu0 %v2056_v12 }
 0x642   :  { %v855_v30 = vpop.f32.mrb[10].mxu0 }
 0x643   :  { %v859_v31 = vadd.f32 %v855_v30, %v296_v29  ;;  %v1774_v33 = vpop.f32.mrb[11].mxu0 }
 0x645   :  { %1991 = vtanh.f32 %v859_v31 }
 0x64f   :  { %v2338_v35 = vpop.eup %1991 }
 0x650   :  { %1784 = vmatmul.mubr.msk.f32.vlgmr.msra.gmra.mrb[16].mxu1 %vm335_vm2, %v2338_v35 }
 0x651   :  { %1936 = vmatpush3.bf16.msra.mxu1 %v2313_v17  ;;  %1805 = vmatprep.mubr.msk.f32.mxu1 %vm2057_vm1, %v2058_v23 }
 0x652   :  { %1937 = vmatprep.subr.bf16.mxu1 %v2056_v12 }
 0x655   :  { %1939 = vmatpush3.bf16.msra.mxu1 %v2319_v19 }
 0x656   :  { %1946 = vmatprep.subr.bf16.mxu1 %v2056_v12 }
 0x723   :  { %v930_v25 = vpop.f32.mrb[16].mxu1 }
 0x724   :  { %v934_v28 = vadd.f32 %v930_v25, %v2227_v27  ;;  %v1785_v37 = vpop.f32.mrb[17].mxu1 }
 0x726   :  { %1993 = vtanh.f32 %v934_v28 }
 0x730   :  { %v1994_v39 = vpop.eup %1993 }
 0x731   :  { %1795 = vmatmul.mubr.msk.f32.vlgmr.msra.gmra.mrb[12].mxu0 %vm335_vm2, %v1994_v39 }
 0x732   :  { %1942 = vmatpush3.bf16.msra.mxu0 %v2313_v17  ;;  %1816 = vmatprep.mubr.msk.f32.mxu0 %vm2057_vm1, %v2058_v23 }
 0x733   :  { %1943 = vmatprep.subr.bf16.mxu0 %v2056_v12 }
 0x736   :  { %1945 = vmatpush3.bf16.msra.mxu0 %v2319_v19 }
 0x737   :  { %1952 = vmatprep.subr.bf16.mxu0 %v2056_v12 }
 0x804   :  { %v1005_v40 = vpop.f32.mrb[12].mxu0 }
 0x805   :  { %v1009_v42 = vadd.f32 %v1005_v40, %v2235_v34  ;;  %v1796_v27 = vpop.f32.mrb[13].mxu0 }
 0x807   :  { %1995 = vtanh.f32 %v1009_v42 }
 0x811   :  { %v1996_v43 = vpop.eup %1995 }
 0x812   :  { %1806 = vmatmul.mubr.msk.f32.vlgmr.msra.gmra.mrb[18].mxu1 %vm335_vm2, %v1996_v43 }
 0x813   :  { %1948 = vmatpush3.bf16.msra.mxu1 %v2313_v17  ;;  %1827 = vmatprep.mubr.msk.f32.mxu1 %vm2057_vm1, %v2058_v23 }
 0x814   :  { %1949 = vmatprep.subr.bf16.mxu1 %v2056_v12 }
 0x817   :  { %1951 = vmatpush3.bf16.msra.mxu1 %v2319_v19 }
 0x818   :  { %1958 = vmatprep.subr.bf16.mxu1 %v2056_v12 }
 0x8e5   :  { %v1080_v45 = vpop.f32.mrb[18].mxu1 }
 0x8e6   :  { %v1084_v46 = vadd.f32 %v1080_v45, %v2232_v32  ;;  %v1807_v34 = vpop.f32.mrb[19].mxu1 }
 0x8e8   :  { %1997 = vtanh.f32 %v1084_v46 }
 0x8f2   :  { %v1998_v47 = vpop.eup %1997 }
 0x8f3   :  { %1817 = vmatmul.mubr.msk.f32.vlgmr.msra.gmra.mrb[14].mxu0 %vm335_vm2, %v1998_v47 }
 0x8f4   :  { %1954 = vmatpush3.bf16.msra.mxu0 %v2313_v17  ;;  %1838 = vmatprep.mubr.msk.f32.mxu0 %vm2057_vm1, %v2058_v23 }
 0x8f5   :  { %1955 = vmatprep.subr.bf16.mxu0 %v2056_v12 }
 0x8f8   :  { %1957 = vmatpush3.bf16.msra.mxu0 %v2319_v19 }
 0x9c6   :  { %v1155_v48 = vpop.f32.mrb[14].mxu0 }
 0x9c7   :  { %v1159_v49 = vadd.f32 %v1155_v48, %v2241_v38  ;;  %v1818_v50 = vpop.f32.mrb[15].mxu0  ;;  %v1387_v38 = vld [vmem:[%s2428_s9 + $0x8] sm:$0xff] }
 0x9c8   :  { %v1964_v52 = vpack.c.bf16 %v1387_v38, %v1386_v51 }
 0x9c9   :  { %1999 = vtanh.f32 %v1159_v49 }
 0x9ca   :  { %1965 = vmatprep.subr.bf16.mxu0 %v1964_v52 }
 0x9d3   :  { %v2000_v32 = vpop.eup %1999 }
 0x9d4   :  { %1828 = vmatmul.mubr.msk.f32.vlgmr.msra.gmra.mrb[20].mxu1 %vm335_vm2, %v2000_v32 }
 0x9d5   :  { %1960 = vmatpush3.bf16.msra.mxu1 %v2313_v17  ;;  %1849 = vmatprep.mubr.msk.f32.mxu1 %vm2057_vm1, %v2058_v23  ;;  %v1389_v23 = vld [vmem:[%s2428_s9 + $0x18] sm:$0xff] }
 0x9d6   :  { %1961 = vmatprep.subr.bf16.mxu1 %v2056_v12  ;;  %v1388_v12 = vld [vmem:[%s2428_s9 + $0x10] sm:$0xff] }
 0x9d7   :  { %v1968_v56 = vpack.c.bf16 %v1389_v23, %v1388_v12 }
 0x9d9   :  { %1963 = vmatpush3.bf16.msra.mxu1 %v2319_v19 }
 0xaa7   :  { %v1230_v53 = vpop.f32.mrb[20].mxu1 }
 0xaa8   :  { %v1234_v54 = vadd.f32 %v1230_v53, %v2238_v36  ;;  %v1829_v55 = vpop.f32.mrb[21].mxu1 }
 0xaaa   :  { %2001 = vtanh.f32 %v1234_v54 }
 0xab4   :  { %v2002_v57 = vpop.eup %2001 }
 0xab5   :  { %1839 = vmatmul.mubr.msk.f32.vlgmr.msra.gmra.mrb[16].mxu0 %vm335_vm2, %v2002_v57 }
 0xab6   :  { %1967 = vmatpush3.bf16.msra.mxu0 %v1964_v52  ;;  %1860 = vmatprep.mubr.msk.f32.mxu0 %vm335_vm2, %v2338_v35 }
 0xab7   :  { %1969 = vmatprep.subr.bf16.mxu0 %v1968_v56 }
 0xaba   :  { %1971 = vmatpush3.bf16.msra.mxu0 %v1968_v56 }
 0xabd   :  { %1861 = vmatmul.mubr.msk.f32.vlgmr.msra.gmra.mrb[18].mxu0 %vm335_vm2, %v1994_v39 }
 0xabe   :  { %1863 = vmatprep.mubr.msk.f32.mxu0 %vm335_vm2, %v1996_v43 }
 0xac1   :  { %1864 = vmatmul.mubr.msk.f32.gmra.mrb[20].mxu0 %vm335_vm2, %v1998_v47 }
 0xac2   :  { %1866 = vmatprep.mubr.msk.f32.mxu0 %vm335_vm2, %v2000_v32 }
 0xac5   :  { %1867 = vmatmul.mubr.msk.f32.gmra.mrb[22].mxu0 %vm335_vm2, %v2002_v57 }
 0xb88   :  { %v1305_v36 = vpop.f32.mrb[16].mxu0 }
 0xb89   :  { %v1309_v58 = vadd.f32 %v1305_v36, %v2253_v44  ;;  %v1840_v59 = vpop.f32.mrb[17].mxu0 }
 0xb8b   :  { %2003 = vtanh.f32 %v1309_v58 }
 0xb90   :  { %v1862_v61 = vpop.f32.mrb[18].mxu0 }
 0xb91   :  { %v1472_v62 = vadd.f32 %v1862_v61, %v1560_v60  ;;  %v1466_v63 = vpop.f32.mrb[19].mxu0 }
 0xb92   :  { %v1467_v0 = vadd.f32 %v1560_v60, %v1466_v63 }
 0xb93   :  { %1506 = vst [vmem:[#allocation5 + $0x8] sm:$0xff] %v1472_v62 }
 0xb94   :  { %1505 = vst [vmem:[#allocation5] sm:$0xff] %v1467_v0  ;;  %v1865_v1 = vpop.f32.mrb[20].mxu0 }
 0xb95   :  { %v2004_v2 = vpop.eup %2003  ;;  %v1482_v3 = vadd.f32 %v1865_v1, %v1560_v60  ;;  %v1476_v4 = vpop.f32.mrb[21].mxu0 }
 0xb96   :  { %v1477_v5 = vadd.f32 %v1560_v60, %v1476_v4  ;;  %1850 = vmatmul.mubr.msk.f32.vlgmr.msra.gmra.mrb[22].mxu1 %vm335_vm2, %v2004_v2  ;;  %1869 = vmatprep.mubr.msk.f32.mxu0 %vm335_vm2, %v2004_v2 }
 0xb97   :  { %1508 = vst [vmem:[#allocation5 + $0x18] sm:$0xff] %v1482_v3 }
 0xb98   :  { %1507 = vst [vmem:[#allocation5 + $0x10] sm:$0xff] %v1477_v5  ;;  %v1868_v44 = vpop.f32.mrb[22].mxu0 }
 0xb99   :  { %v1492_v6 = vadd.f32 %v1868_v44, %v1560_v60  ;;  %v1486_v7 = vpop.f32.mrb[23].mxu0 }
 0xb9a   :  { %v1487_v8 = vadd.f32 %v1560_v60, %v1486_v7 }
 0xb9b   :  { %1510 = vst [vmem:[#allocation5 + $0x28] sm:$0xff] %v1492_v6 }
 0xb9c   :  { %1509 = vst [vmem:[#allocation5 + $0x20] sm:$0xff] %v1487_v8 }
 0xc69   :  { %v1380_v9 = vpop.f32.mrb[22].mxu1 }
 0xc6a   :  { %v1384_v10 = vadd.f32 %v1380_v9, %v2249_v41  ;;  %v1851_v11 = vpop.f32.mrb[23].mxu1 }
 0xc6c   :  { %2005 = vtanh.f32 %v1384_v10 }
 0xc76   :  { %v2006_v13 = vpop.eup %2005 }
 0xc77   :  { %1870 = vmatmul.mubr.msk.f32.gmra.mrb[24].mxu0 %vm335_vm2, %v2006_v13 }
 0xd4a   :  { %v1871_v14 = vpop.f32.mrb[24].mxu0 }
 0xd4b   :  { %v1502_v15 = vadd.f32 %v1871_v14, %v1560_v60  ;;  %v1496_v16 = vpop.f32.mrb[25].mxu0 }
 0xd4c   :  { %v1497_v17 = vadd.f32 %v1560_v60, %v1496_v16 }
 0xd4d   :  { %1512 = vst [vmem:[#allocation5 + $0x38] sm:$0xff] %v1502_v15 }
 0xd4e   :  { %1511 = vst [vmem:[#allocation5 + $0x30] sm:$0xff] %v1497_v17 }
 0xd4f   :  { %2040 = shalt.err (!%p2037_p12)
}
 0xd50   :  { %s2041_s23 = scalar_lea.hbm %s2430_s11, 1024 }
 0xd51   :  { %p2042_p13 = scmp.ne.s32.totalorder %s2430_s11, %s2041_s23  ;;  %p2045_p0 = scmp.lt.u32.totalorder %s2041_s23, %s2430_s11 }
 0xd53   :  { %p2047_p1 = pnand %p2045_p0, %p2042_p13 }
 0xd55   :  { %2050 = shalt.err (!%p2047_p1)
}
 0xd56   :  { %s2060_s3 = smov 128   ;;  %s2061_s28 = smov 8  }
 0xd57   :  { %1524 = dma.vmem_to_hbm [thread:$0]  %s1519_s21, 1024, %s2430_s11, [#allocation4], %s2060_s3, %s2060_s3, %s2061_s28  }
 0xd58   :  { %2053 = dma.done.wait [#allocation4], 1024  }
 0xd59   :  { %2054 = vsyncadd [#allocation4], 4294966272 }
 0xd5a   :  { %1528 = vsyncpa [#allocation3], 1 }
 0xd5b   :  { %1529 = vsyncpa [#allocation4], 1 }

</bundles_post_ra>
